<compile_context>
chip_gen: v5e
topology: v5e:2x2
jax: 0.10.0
libtpu: 0.0.40
codegen_flags: <defaults>
</compile_context>

<pallas_src>
import functools

import jax
import jax.numpy as jnp
from jax.experimental import pallas as pl
from jax.experimental.pallas import tpu as pltpu


def _dice_kernel(x_ref, t_ref, inter_ref, pin_ref, tgt_ref, *,
                 tr, r_rows, grid_r, c, needs_mask, approx):
    """One grid step: (c, tr, Lt) logits slab + (tr, Lt) targets slab."""
    j = pl.program_id(2)

    # Output blocks are resident across the inner (arbitrary) axis: init once.
    @pl.when(j == 0)
    def _():
        inter_ref[...] = jnp.zeros_like(inter_ref)
        pin_ref[...] = jnp.zeros_like(pin_ref)
        tgt_ref[...] = jnp.zeros_like(tgt_ref)

    # Streamed softmax prob of class 1: p1 = 1 / sum_c exp(x_c - x_1).
    # (For C == 2 this is exactly sigmoid(x1 - x0).)  Keeps the live set to
    # ~2 (tr, Lt) slabs instead of materializing exp(x - max) for all channels.
    x1 = x_ref[1].astype(jnp.float32)                     # (tr, Lt)
    denom = jnp.ones_like(x1)                             # channel-1 term exp(0)=1
    for ch in range(c):
        if ch == 1:
            continue
        denom = denom + jnp.exp(x_ref[ch].astype(jnp.float32) - x1)
    if approx:
        p1 = pl.reciprocal(denom, approx=True)            # EUP slot, ~free
    else:
        p1 = 1.0 / denom
    t = t_ref[...].astype(jnp.float32)                    # (tr, Lt)

    def _fold(v):
        # (tr, Lt) -> (acc_rows, Lt): vreg-aligned row-group fold (VPU adds only).
        if tr % 8 == 0 and tr > 8:
            return v.reshape(tr // 8, 8, v.shape[-1]).sum(axis=0)
        return v

    def _accumulate(pv, tv):
        inter_ref[...] += _fold(pv * tv)
        pin_ref[...] += _fold(pv)
        tgt_ref[...] += _fold(tv)

    if needs_mask:
        blk = pl.program_id(1) * grid_r + j               # unclamped row-block idx
        fully_valid = (blk + 1) * tr <= r_rows

        @pl.when(fully_valid)
        def _():
            _accumulate(p1, t)                            # fast path: no mask ops

        @pl.when(jnp.logical_not(fully_valid))
        def _():
            # Mask applied AFTER p1 is fully formed: where() discards any
            # NaN/Inf produced from out-of-bounds garbage rows.  Fully-OOB
            # blocks (clamped in the index_map) mask to all-zero.
            rows = jax.lax.broadcasted_iota(jnp.int32, (tr, 1), 0)
            valid = (blk * tr + rows) < r_rows            # (tr, 1), lane-broadcast
            _accumulate(jnp.where(valid, p1, 0.0), jnp.where(valid, t, 0.0))
    else:
        _accumulate(p1, t)


def _tpu_defaults():
    """Generation-aware defaults: (step_bytes, vmem_capacity_bytes)."""
    step, cap = 8 << 20, 64 << 20
    try:
        info = pltpu.get_tpu_info()
        cap = int(getattr(info, "vmem_capacity_bytes", 0)) or cap
        name = str(getattr(info, "chip_version", "")).lower()
        if "7" in name:
            step = 10 << 20     # v7x: 3.2 TB/s HBM -> bigger step to amortize overhead
        elif "6" in name:
            step = 8 << 20
        elif "5" in name:
            step = 6 << 20
    except Exception:
        pass
    return step, cap


def _pick_lane_width(h, w):
    """Zero-copy lane-dense view of the (H, W) plane: (R, Lt) with R*Lt = H*W."""
    if w % 128 == 0:
        return h, w                      # already lane-dense
    p = h * w
    for k in range(16, 0, -1):           # widest 128-multiple divisor <= 2048 lanes
        lt = 128 * k
        if p % lt == 0:
            return p // lt, lt
    return h, w                          # fallback: natural (lane-sparse) layout


def dice_loss(inputs, targets, smooth=1.0, *, step_bytes=None, n_row_splits=2,
              approx_reciprocal=True):
    """Dice loss over softmax(inputs, axis=1)[:, 1], global reduction.

    inputs:  (N, C, H, W) logits — f32 or bf16 (bf16 halves HBM bytes).
    targets: (N, H, W) in {0, 1} — f32 / bf16 / int8 / bool.
    """
    n, c, h, w = inputs.shape
    assert c >= 2, "DiceLoss takes softmax class 1; needs C >= 2"
    assert targets.shape == (n, h, w)

    if targets.dtype == jnp.bool_:
        targets = targets.astype(jnp.int8)

    default_step, vmem_cap = _tpu_defaults()
    if step_bytes is None:
        step_bytes = default_step

    # Zero-copy lane-dense view of the spatial plane.
    r_rows, lt = _pick_lane_width(h, w)
    x = inputs.reshape(n, c, r_rows, lt)
    t = targets.reshape(n, r_rows, lt)

    li = jnp.dtype(x.dtype).itemsize
    ti = jnp.dtype(t.dtype).itemsize
    rm = max(8, 32 // li, 32 // ti)       # row multiple for (8/16/32, 128) tiling

    bytes_per_row = (c * li + ti) * lt
    tr = max(rm, (int(step_bytes) // max(1, bytes_per_row)) // rm * rm)
    if r_rows >= rm:
        tr = min(tr, (r_rows // rm) * rm)
    else:
        tr = r_rows                       # tiny plane: single full-height block

    def _acc_rows(tr_):
        return 8 if (tr_ % 8 == 0 and tr_ > 8) else tr_

    def _vmem_need(tr_):
        blk_in = 2 * (c * li + ti) * tr_ * lt          # double-buffered inputs
        temps = 6 * tr_ * lt * 4                       # f32 p1/denom/exp/mask temps
        outs = 2 * 3 * _acc_rows(tr_) * lt * 4         # resident partial outputs
        return blk_in + temps + outs

    budget = int(vmem_cap * 0.85)
    while _vmem_need(tr) > budget and tr > rm:         # extreme C*W guard
        tr = max(rm, ((tr // 2) // rm) * rm)
    vmem_limit = int(min(vmem_cap, max(32 << 20, _vmem_need(tr) + (8 << 20))))

    nblocks = pl.cdiv(r_rows, tr)
    n_split = max(1, min(int(n_row_splits), nblocks))  # keep both v7x TCs busy at N==1
    grid_r = pl.cdiv(nblocks, n_split)
    needs_mask = (n_split * grid_r * tr != r_rows)
    acc_rows = _acc_rows(tr)

    def _row_block(s, j):
        b = s * grid_r + j
        if needs_mask:
            b = jnp.minimum(b, nblocks - 1)   # fully-OOB blocks re-read the last
        return b                              # block; the kernel masks them to 0

    kernel = functools.partial(
        _dice_kernel, tr=tr, r_rows=r_rows, grid_r=grid_r, c=c,
        needs_mask=needs_mask, approx=approx_reciprocal)

    part_shape = jax.ShapeDtypeStruct((n, n_split, acc_rows, lt), jnp.float32)
    part_spec = pl.BlockSpec((None, None, acc_rows, lt),
                             lambda i, s, j: (i, s, 0, 0))

    inter_p, pin_p, tgt_p = pl.pallas_call(
        kernel,
        out_shape=(part_shape, part_shape, part_shape),
        grid_spec=pltpu.PrefetchScalarGridSpec(
            num_scalar_prefetch=0,
            grid=(n, n_split, grid_r),
            in_specs=[
                pl.BlockSpec((None, c, tr, lt),
                             lambda i, s, j: (i, 0, _row_block(s, j), 0)),
                pl.BlockSpec((None, tr, lt),
                             lambda i, s, j: (i, _row_block(s, j), 0)),
            ],
            out_specs=[part_spec, part_spec, part_spec],
        ),
        compiler_params=pltpu.CompilerParams(
            dimension_semantics=("parallel", "parallel", "arbitrary"),
            vmem_limit_bytes=vmem_limit),
    )(x, t)

    # Tiny scalar epilogue (a few flops) on the partial sums.
    inter = jnp.sum(inter_p)
    p_sum = jnp.sum(pin_p)
    t_sum = jnp.sum(tgt_p)
    dice = (2.0 * inter + smooth) / (p_sum + t_sum + smooth)
    return (1.0 - dice).astype(jnp.float32)


def dice_loss_ref(inputs, targets, smooth=1.0):
    p = jax.nn.softmax(inputs.astype(jnp.float32), axis=1)[:, 1, ...].reshape(-1)
    t = targets.reshape(-1).astype(jnp.float32)
    inter = jnp.sum(p * t)
    return 1.0 - (2.0 * inter + smooth) / (jnp.sum(p) + jnp.sum(t) + smooth)


if __name__ == "__main__":
    key = jax.random.PRNGKey(0)
    cases = [
        # (shape, logits dtype, approx_recip, step_bytes, tol)
        ((2, 2, 16, 16), jnp.float32, False, None, 1e-5),     # C==2, lane-dense flatten
        ((1, 2, 30, 20), jnp.float32, False, None, 1e-5),     # unaligned W fallback + edge mask
        ((2, 4, 16, 16), jnp.float32, False, None, 1e-5),     # general C, streamed softmax
        ((2, 3, 16, 24), jnp.bfloat16, False, None, 1e-5),    # bf16 logits (fewer HBM bytes)
        ((1, 2, 256, 128), jnp.float32, True, 64 << 10, 1e-3),  # multi-step, 2-way row split,
                                                                 # approx reciprocal, OOB clamp
    ]
    for shape, dt, approx, sb, tol in cases:
        n_, c_, h_, w_ = shape
        key, k_x, k_t = jax.random.split(key, 3)
        inputs = jax.random.normal(k_x, shape, dtype=jnp.float32).astype(dt)
        targets = (jax.random.uniform(k_t, (n_, h_, w_)) > 0.7).astype(jnp.float32)

        loss = dice_loss(inputs, targets, smooth=1.0,
                         step_bytes=sb, approx_reciprocal=approx)
        jax.block_until_ready(loss)
        ref = dice_loss_ref(inputs, targets, smooth=1.0)
        assert jnp.allclose(loss, ref, atol=tol, rtol=tol), (shape, float(loss), float(ref))

    print("KERNEL_OK")
</pallas_src>

<mosaic_0001>
module attributes {stable_mosaic.version = 11 : i64} {
  func.func @_dice_kernel(%arg0: i32, %arg1: i32, %arg2: i32, %arg3: memref<1x2x1x256xf32, #tpu.memory_space<vmem>>, %arg4: memref<1x1x256xf32, #tpu.memory_space<vmem>>, %arg5: memref<1x1x1x256xf32, #tpu.memory_space<vmem>>, %arg6: memref<1x1x1x256xf32, #tpu.memory_space<vmem>>, %arg7: memref<1x1x1x256xf32, #tpu.memory_space<vmem>>) attributes {dimension_semantics = [#tpu.dimension_semantics<parallel>, #tpu.dimension_semantics<parallel>, #tpu.dimension_semantics<arbitrary>], iteration_bounds = array<i64: 2, 1, 1>, scalar_prefetch = 0 : i64, scratch_operands = 0 : i64, tpu.core_type = #tpu.core_type<tc>, window_params = [{transform_indices = @transform_0, window_bounds = array<i64: 1, 2, 1, 256>}, {transform_indices = @transform_1, window_bounds = array<i64: 1, 1, 256>}, {transform_indices = @transform_2, window_bounds = array<i64: 1, 1, 1, 256>}, {transform_indices = @transform_3, window_bounds = array<i64: 1, 1, 1, 256>}, {transform_indices = @transform_4, window_bounds = array<i64: 1, 1, 1, 256>}]} {
    %c0_i32 = arith.constant 0 : i32
    %0 = arith.cmpi eq, %arg2, %c0_i32 : i32
    %1 = arith.extui %0 : i1 to i32
    %c0_i32_0 = arith.constant 0 : i32
    %2 = arith.cmpi ne, %1, %c0_i32_0 : i32
    scf.if %2 {
      %cst_35 = arith.constant 0.000000e+00 : f32
      %34 = vector.broadcast %cst_35 : f32 to vector<1x256xf32>
      %c0_36 = arith.constant 0 : index
      %c0_37 = arith.constant 0 : index
      %c0_38 = arith.constant 0 : index
      %c0_39 = arith.constant 0 : index
      %35 = vector.load %arg5[%c0_36, %c0_37, %c0_38, %c0_39] : memref<1x1x1x256xf32, #tpu.memory_space<vmem>>, vector<1x1x1x256xf32>
      %36 = vector.shape_cast %35 : vector<1x1x1x256xf32> to vector<1x256xf32>
      %37 = vector.shape_cast %34 : vector<1x256xf32> to vector<1x1x1x256xf32>
      tpu.vector_store %arg5[%c0_36, %c0_37, %c0_38, %c0_39], %37 {strides = array<i32>} : memref<1x1x1x256xf32, #tpu.memory_space<vmem>>, vector<1x1x1x256xf32>,
      %cst_40 = arith.constant 0.000000e+00 : f32
      %38 = vector.broadcast %cst_40 : f32 to vector<1x256xf32>
      %c0_41 = arith.constant 0 : index
      %c0_42 = arith.constant 0 : index
      %c0_43 = arith.constant 0 : index
      %c0_44 = arith.constant 0 : index
      %39 = vector.load %arg6[%c0_41, %c0_42, %c0_43, %c0_44] : memref<1x1x1x256xf32, #tpu.memory_space<vmem>>, vector<1x1x1x256xf32>
      %40 = vector.shape_cast %39 : vector<1x1x1x256xf32> to vector<1x256xf32>
      %41 = vector.shape_cast %38 : vector<1x256xf32> to vector<1x1x1x256xf32>
      tpu.vector_store %arg6[%c0_41, %c0_42, %c0_43, %c0_44], %41 {strides = array<i32>} : memref<1x1x1x256xf32, #tpu.memory_space<vmem>>, vector<1x1x1x256xf32>,
      %cst_45 = arith.constant 0.000000e+00 : f32
      %42 = vector.broadcast %cst_45 : f32 to vector<1x256xf32>
      %c0_46 = arith.constant 0 : index
      %c0_47 = arith.constant 0 : index
      %c0_48 = arith.constant 0 : index
      %c0_49 = arith.constant 0 : index
      %43 = vector.load %arg7[%c0_46, %c0_47, %c0_48, %c0_49] : memref<1x1x1x256xf32, #tpu.memory_space<vmem>>, vector<1x1x1x256xf32>
      %44 = vector.shape_cast %43 : vector<1x1x1x256xf32> to vector<1x256xf32>
      %45 = vector.shape_cast %42 : vector<1x256xf32> to vector<1x1x1x256xf32>
      tpu.vector_store %arg7[%c0_46, %c0_47, %c0_48, %c0_49], %45 {strides = array<i32>} : memref<1x1x1x256xf32, #tpu.memory_space<vmem>>, vector<1x1x1x256xf32>,
    } else {
    }
    %c0 = arith.constant 0 : index
    %c1 = arith.constant 1 : index
    %c0_1 = arith.constant 0 : index
    %c0_2 = arith.constant 0 : index
    %3 = vector.load %arg3[%c0, %c1, %c0_1, %c0_2] : memref<1x2x1x256xf32, #tpu.memory_space<vmem>>, vector<1x1x1x256xf32>
    %4 = vector.shape_cast %3 : vector<1x1x1x256xf32> to vector<1x256xf32>
    %cst = arith.constant 1.000000e+00 : f32
    %5 = vector.broadcast %cst : f32 to vector<1x256xf32>
    %c0_3 = arith.constant 0 : index
    %c0_4 = arith.constant 0 : index
    %c0_5 = arith.constant 0 : index
    %c0_6 = arith.constant 0 : index
    %6 = vector.load %arg3[%c0_3, %c0_4, %c0_5, %c0_6] : memref<1x2x1x256xf32, #tpu.memory_space<vmem>>, vector<1x1x1x256xf32>
    %7 = vector.shape_cast %6 : vector<1x1x1x256xf32> to vector<1x256xf32>
    %8 = arith.subf %7, %4 : vector<1x256xf32>
    %9 = math.exp %8 : vector<1x256xf32>
    %10 = arith.addf %5, %9 : vector<1x256xf32>
    %cst_7 = arith.constant 1.000000e+00 : f32
    %11 = vector.broadcast %cst_7 : f32 to vector<1x256xf32>
    %12 = arith.divf %11, %10 : vector<1x256xf32>
    %c0_8 = arith.constant 0 : index
    %c0_9 = arith.constant 0 : index
    %c0_10 = arith.constant 0 : index
    %13 = vector.load %arg4[%c0_8, %c0_9, %c0_10] : memref<1x1x256xf32, #tpu.memory_space<vmem>>, vector<1x1x256xf32>
    %14 = vector.shape_cast %13 : vector<1x1x256xf32> to vector<1x256xf32>
    %c0_11 = arith.constant 0 : index
    %c0_12 = arith.constant 0 : index
    %c0_13 = arith.constant 0 : index
    %c0_14 = arith.constant 0 : index
    %15 = vector.load %arg5[%c0_11, %c0_12, %c0_13, %c0_14] : memref<1x1x1x256xf32, #tpu.memory_space<vmem>>, vector<1x1x1x256xf32>
    %16 = vector.shape_cast %15 : vector<1x1x1x256xf32> to vector<1x256xf32>
    %17 = arith.mulf %12, %14 : vector<1x256xf32>
    %18 = arith.addf %16, %17 : vector<1x256xf32>
    %c0_15 = arith.constant 0 : index
    %c0_16 = arith.constant 0 : index
    %c0_17 = arith.constant 0 : index
    %c0_18 = arith.constant 0 : index
    %19 = vector.load %arg5[%c0_15, %c0_16, %c0_17, %c0_18] : memref<1x1x1x256xf32, #tpu.memory_space<vmem>>, vector<1x1x1x256xf32>
    %20 = vector.shape_cast %19 : vector<1x1x1x256xf32> to vector<1x256xf32>
    %21 = vector.shape_cast %18 : vector<1x256xf32> to vector<1x1x1x256xf32>
    tpu.vector_store %arg5[%c0_15, %c0_16, %c0_17, %c0_18], %21 {strides = array<i32>} : memref<1x1x1x256xf32, #tpu.memory_space<vmem>>, vector<1x1x1x256xf32>,
    %c0_19 = arith.constant 0 : index
    %c0_20 = arith.constant 0 : index
    %c0_21 = arith.constant 0 : index
    %c0_22 = arith.constant 0 : index
    %22 = vector.load %arg6[%c0_19, %c0_20, %c0_21, %c0_22] : memref<1x1x1x256xf32, #tpu.memory_space<vmem>>, vector<1x1x1x256xf32>
    %23 = vector.shape_cast %22 : vector<1x1x1x256xf32> to vector<1x256xf32>
    %24 = arith.addf %23, %12 : vector<1x256xf32>
    %c0_23 = arith.constant 0 : index
    %c0_24 = arith.constant 0 : index
    %c0_25 = arith.constant 0 : index
    %c0_26 = arith.constant 0 : index
    %25 = vector.load %arg6[%c0_23, %c0_24, %c0_25, %c0_26] : memref<1x1x1x256xf32, #tpu.memory_space<vmem>>, vector<1x1x1x256xf32>
    %26 = vector.shape_cast %25 : vector<1x1x1x256xf32> to vector<1x256xf32>
    %27 = vector.shape_cast %24 : vector<1x256xf32> to vector<1x1x1x256xf32>
    tpu.vector_store %arg6[%c0_23, %c0_24, %c0_25, %c0_26], %27 {strides = array<i32>} : memref<1x1x1x256xf32, #tpu.memory_space<vmem>>, vector<1x1x1x256xf32>,
    %c0_27 = arith.constant 0 : index
    %c0_28 = arith.constant 0 : index
    %c0_29 = arith.constant 0 : index
    %c0_30 = arith.constant 0 : index
    %28 = vector.load %arg7[%c0_27, %c0_28, %c0_29, %c0_30] : memref<1x1x1x256xf32, #tpu.memory_space<vmem>>, vector<1x1x1x256xf32>
    %29 = vector.shape_cast %28 : vector<1x1x1x256xf32> to vector<1x256xf32>
    %30 = arith.addf %29, %14 : vector<1x256xf32>
    %c0_31 = arith.constant 0 : index
    %c0_32 = arith.constant 0 : index
    %c0_33 = arith.constant 0 : index
    %c0_34 = arith.constant 0 : index
    %31 = vector.load %arg7[%c0_31, %c0_32, %c0_33, %c0_34] : memref<1x1x1x256xf32, #tpu.memory_space<vmem>>, vector<1x1x1x256xf32>
    %32 = vector.shape_cast %31 : vector<1x1x1x256xf32> to vector<1x256xf32>
    %33 = vector.shape_cast %30 : vector<1x256xf32> to vector<1x1x1x256xf32>
    tpu.vector_store %arg7[%c0_31, %c0_32, %c0_33, %c0_34], %33 {strides = array<i32>} : memref<1x1x1x256xf32, #tpu.memory_space<vmem>>, vector<1x1x1x256xf32>,
    return
  }
  func.func @transform_0(%arg0: i32, %arg1: i32, %arg2: i32) -> (i32, i32, i32, i32) {
    %c1_i32 = arith.constant 1 : i32
    %0 = arith.muli %arg1, %c1_i32 : i32
    %1 = arith.addi %0, %arg2 : i32
    %c0_i32 = arith.constant 0 : i32
    %c0_i32_0 = arith.constant 0 : i32
    %c0_i32_1 = arith.constant 0 : i32
    return %arg0, %c0_i32, %1, %c0_i32_0 : i32, i32, i32, i32
  }
  func.func @transform_1(%arg0: i32, %arg1: i32, %arg2: i32) -> (i32, i32, i32) {
    %c1_i32 = arith.constant 1 : i32
    %0 = arith.muli %arg1, %c1_i32 : i32
    %1 = arith.addi %0, %arg2 : i32
    %c0_i32 = arith.constant 0 : i32
    %c0_i32_0 = arith.constant 0 : i32
    return %arg0, %1, %c0_i32 : i32, i32, i32
  }
  func.func @transform_2(%arg0: i32, %arg1: i32, %arg2: i32) -> (i32, i32, i32, i32) {
    %c0_i32 = arith.constant 0 : i32
    %c0_i32_0 = arith.constant 0 : i32
    %c0_i32_1 = arith.constant 0 : i32
    return %arg0, %arg1, %c0_i32, %c0_i32_0 : i32, i32, i32, i32
  }
  func.func @transform_3(%arg0: i32, %arg1: i32, %arg2: i32) -> (i32, i32, i32, i32) {
    %c0_i32 = arith.constant 0 : i32
    %c0_i32_0 = arith.constant 0 : i32
    %c0_i32_1 = arith.constant 0 : i32
    return %arg0, %arg1, %c0_i32, %c0_i32_0 : i32, i32, i32, i32
  }
  func.func @transform_4(%arg0: i32, %arg1: i32, %arg2: i32) -> (i32, i32, i32, i32) {
    %c0_i32 = arith.constant 0 : i32
    %c0_i32_0 = arith.constant 0 : i32
    %c0_i32_1 = arith.constant 0 : i32
    return %arg0, %arg1, %c0_i32, %c0_i32_0 : i32, i32, i32, i32
  }
}

</mosaic_0001>

<bundles_post_ra>
// kernel: tpu_custom_call.1
= control target key start
LH: loop header
LB: loop body
LE: loop exit
PB: predicated region body
PF: predicated region fallthrough
CT: control target
= control target key end

     0   :  { %s1175_s0 = inlined_call_operand.hbm [shape: f32[2,2,1,256], index: 0, kind: input, shape index: {}]   ;;  %s1176_s1 = inlined_call_operand.hbm [shape: f32[2,1,256], index: 1, kind: input, shape index: {}]   ;;  %s1177_s2 = inlined_call_operand.hbm [shape: f32[2,1,1,256], index: 2, kind: output, shape index: {0}]   ;;  %s1178_s3 = inlined_call_operand.hbm [shape: f32[2,1,1,256], index: 3, kind: output, shape index: {1}]   ;;  %s1179_s4 = inlined_call_operand.hbm [shape: f32[2,1,1,256], index: 4, kind: output, shape index: {2}]  }
   0x1   :  { %1182 = sst [smem:[#allocation16_spill]] %s1175_s0 }
   0x2   :  { %10 = vsyncpa [#allocation3], 0 }
   0x3   :  { %12 = vsyncpa [#allocation3 + $0x1], 0 }
   0x4   :  { %13 = vsyncpa [#allocation6], 0 }
   0x5   :  { %15 = vsyncpa [#allocation6 + $0x1], 0 }
   0x6   :  { %16 = vsyncpa [#allocation4], 0 }
   0x7   :  { %18 = vsyncpa [#allocation4 + $0x1], 0 }
   0x8   :  { %19 = vsyncpa [#allocation9], 0 }
   0x9   :  { %21 = vsyncpa [#allocation9 + $0x1], 0  ;;  %s945_s15 = smov 0   ;;  %s947_s16 = smov 0  }
   0xa   :  { %s949_s17 = smov 0   ;;  %s951_s18 = smov 0  }
   0xb   :  { %s953_s19 = smov 0   ;;  %s955_s20 = smov 0  }
   0xc LB: > { %s976_s21 = sadd.s32 4294967295, %s915_s20   ;;  %s1180_s22 = sadd.s32 4294967294, %s915_s20   ;;  %s915_s20 = sphi %s955_s20, %s27_s20   ;;  %s911_s19 = sphi %s953_s19, %s1198_s19   ;;  %s907_s18 = sphi %s951_s18, %s1197_s18   ;;  %s903_s17 = sphi %s949_s17, %s1196_s17   ;;  %s899_s16 = sphi %s947_s16, %s1195_s16   ;;  %s895_s15 = sphi %s945_s15, %s1194_s15  }
   0xd   : > { %s46_s23 = sadd.s32 1, %s911_s19  ;;  %s57_s24 = sadd.s32 1, %s903_s17 }
   0xe   : > { %p48_p0 = scmp.ge.s32.totalorder %s46_s23, 2  ;;  %p64_p1 = scmp.ne.s32.totalorder %s903_s17, %s899_s16 }
   0xf   : > { %p65_p2 = scmp.eq.s32.totalorder %s915_s20, 0  ;;  %p70_p3 = scmp.ne.s32.totalorder %s899_s16, %s895_s15 }
  0x10   : > { %s1200_s23 = smov (%p48_p0, %s46_s23), 0  ;;  %p71_p5 = scmp.eq.s32.totalorder %s976_s21, 0 }
  0x11   : > { %1183 = sst [smem:[#allocation15_spill]] %s1200_s23  ;;  %p988_p4 = por %p65_p2, %p64_p1 }
  0x12   : > { %s52_s26 = ssub.s32 %s911_s19, %s1200_s23  ;;  %p126_p6 = scmp.eq.s32.totalorder %s976_s21, 1 }
  0x13   : > { %p55_p7 = scmp.eq.s32.totalorder %s52_s26, 0  ;;  %p996_p8 = por %p71_p5, %p70_p3 }
  0x14   : > { %p1000_p9 = por %p126_p6, %p64_p1  ;;  %p132_p10 = scmp.eq.s32.totalorder %s1180_s22, 1 }
  0x15   : > { %s1007_s29 = scalar_select %p55_p7, %s903_s17, %s57_s24  }
  0x16   : > { %p1009_p11 = por %p132_p10, %p70_p3  ;;  %p605_p12 = scmp.ge.s32.totalorder %s915_s20, 2 }
  0x17   : > { %p652_p13 = scmp.lt.s32.totalorder %s915_s20, 2  ;;  %s208_s5 = sand.u32 1, %s903_s17  }
  0x18   : > { %s606_s6 = sshll.u32 %s208_s5, 2  ;;  %s607_s7 = sshll.u32 %s911_s19, 2 }
  0x19   : > { %s1188_s0 = sld [smem:[#allocation16_spill]]  ;;  %s212_s11 = scalar_lea.vmem [#allocation2], %s606_s6 }
  0x1a   : > { %s222_s12 = sshll.u32 %s212_s11, 4  ;;  %p1022_p0 = pnand %p652_p13, %p988_p4  ;;  %s223_s12 = int_to_ptr.vmem [resolvable:$true] %s222_s12 }
  0x1b   : > { %p610_p1 = scmp.ge.s32.totalorder %s915_s20, 1  ;;  %s209_s24 = scalar_lea.sflag [#allocation3], %s208_s5 }
  0x1c   : > { %s917_s26 = smov 32   ;;  %s918_s22 = smov 2  }
  0x1d   : > { %p252_p2 = scmp.lt.s32.totalorder %s915_s20, 3  ;;  %s609_s6 = sshll.u32 %s911_s19, 1 }
  0x1e   : > { %s243_s25 = scalar_lea.hbm %s1176_s1, %s609_s6  ;;  %s233_s23 = scalar_lea.sflag [#allocation6], %s208_s5 }
  0x1f   : > { %s219_s10 = scalar_lea.hbm %s1188_s0, %s607_s7  ;;  %s608_s7 = sshll.u32 %s208_s5, 1 }
  0x20   : > { %s220_s13 = sshll.u32 %s219_s10, 4  ;;  %p253_p3 = pnand %p610_p1, %p252_p2  ;;  %s221_s13 = int_to_ptr.hbm [resolvable:$true] %s220_s13 }
  0x21   : > { %638 = dma.hbm_to_vmem [thread:$0]  (!%p1022_p0), %s221_s13, 64, %s223_s12, %s209_s24, %s917_s26, %s917_s26, %s918_s22  }
  0x22   : > { %s236_s10 = scalar_lea.vmem [#allocation5], %s608_s7  ;;  %s245_s0 = sshll.u32 %s243_s25, 4  ;;  %s246_s0 = int_to_ptr.hbm [resolvable:$true] %s245_s0 }
  0x23   : > { %s247_s11 = sshll.u32 %s236_s10, 4  ;;  %256 = sbr.rel (%p253_p3) target bundleno = 105 (0x69), region = 28  ;;  %s248_s11 = int_to_ptr.vmem [resolvable:$true] %s247_s11 }
  0x24   : > { %641 = dma.hbm_to_vmem [thread:$0]  (!%p1022_p0), %s246_s0, 32, %s248_s11, %s233_s23  }
  0x25   : > { %s1037_s22 = sand.u32 (!%p253_p3), 1, %s899_s16  }
  0x26   : > { %s611_s12 = sshll.u32 (!%p253_p3), %s1037_s22, 2  ;;  %s259_s13 = scalar_lea.sflag (!%p253_p3), [#allocation3], %s1037_s22 }
  0x27   : > { %s262_s24 = scalar_lea.vmem (!%p253_p3), [#allocation2], %s611_s12 }
  0x28   : > { %878 = dma.done.wait (%p996_p8), %s259_s13, 64  }
  0x29   : > { %880 = vsyncadd (%p996_p8), %s259_s13, 4294967232  ;;  %s612_s5 = sshll.u32 %s1037_s22, 1  ;;  %s269_s0 = scalar_lea.sflag [#allocation6], %s1037_s22 }
  0x2a   : > { %s272_s23 = scalar_lea.vmem [#allocation5], %s612_s5 }
  0x2b   : > { %882 = dma.done.wait (%p996_p8), %s269_s0, 32  }
  0x2c   : > { %884 = vsyncadd (%p996_p8), %s269_s0, 4294967264  ;;  %v319_v0 = vlaneseq  ;;  %s1055_s14 = scalar_lea.vmem [#allocation8], %s612_s5  ;;  %v919_v2 = vmov 0.0   ;;  %s1060_s26 = scalar_lea.vmem [#allocation7], %s612_s5  ;;  %v616_v3 = vld [vmem:[%s262_s24 + $0x2] sm:$0x3] }
  0x2d   : > { %s1065_s27 = scalar_lea.vmem [#allocation10], %s612_s5  ;;  %v328_v4 = vld [vmem:[%s262_s24] sm:$0x3]  ;;  %v348_v7 = vld [vmem:[%s272_s23] sm:$0x3]  ;;  %s620_s7 = sshll.u32 %s907_s18, 1 }
  0x2e   : > { %vm1051_vm0 = vcmp.lt.s32.totalorder %v319_v0, 256  ;;  %v329_v5 = vsub.f32 %v328_v4, %v616_v3  ;;  %s368_s6 = sand.u32 1, %s976_s21   ;;  %s402_s25 = scalar_lea.hbm %s1178_s3, %s620_s7 }
  0x2f   : > { %324 = vst.msk [vmem:[%s1055_s14] sm:$0x3] %vm1051_vm0, %v919_v2  ;;  %s420_s10 = sshll.u32 %s1065_s27, 4  ;;  %s418_s18 = scalar_lea.hbm %s1179_s4, %s620_s7  ;;  %s1090_s10 = int_to_ptr.vmem [resolvable:$true] %s420_s10 }
  0x30   : > { %323 = vst.msk [vmem:[%s1060_s26] sm:$0x3] %vm1051_vm0, %v919_v2  ;;  %v330_v6 = vmul.f32 1.442695, %v329_v5  ;;  %s386_s21 = scalar_lea.hbm %s1177_s2, %s620_s7  ;;  %s404_s5 = sshll.u32 %s1055_s14, 4  ;;  %s405_s5 = int_to_ptr.vmem [resolvable:$true] %s404_s5 }
  0x31   : > { %325 = vst.msk [vmem:[%s1065_s27] sm:$0x3] %vm1051_vm0, %v919_v2  ;;  %s1088_s0 = sshll.u32 %s402_s25, 4  ;;  %s1092_s23 = sshll.u32 %s418_s18, 4  ;;  %s407_s0 = int_to_ptr.hbm [resolvable:$true] %s1088_s0  ;;  %s423_s23 = int_to_ptr.hbm [resolvable:$true] %s1092_s23 }
  0x32   : > { %705 = vpow2.f32 %v330_v6  ;;  %s1096_s8 = sshll.u32 %s386_s21, 4  ;;  %s369_s7 = scalar_lea.sflag [#allocation9], %s368_s6  ;;  %s391_s8 = int_to_ptr.hbm [resolvable:$true] %s1096_s8 }
  0x33   : > { %s783_s9 = sshra.s32 %s407_s0, 4  ;;  %s789_s18 = scalar_lea.hbm %s1178_s3, 4  ;;  %s784_s9 = int_to_ptr.hbm [resolvable:$true] %s783_s9 }
  0x34   : > { %s785_s25 = scalar_lea.hbm %s784_s9, 2  ;;  %p790_p7 = scmp.lt.s32.totalorder %s784_s9, %s1178_s3 }
  0x35   : > { %p786_p4 = scmp.ne.s32.totalorder %s784_s9, %s785_s25  ;;  %p791_p8 = scmp.lt.s32.totalorder %s789_s18, %s785_s25 }
  0x36   : > { %v357_v20 = vld [vmem:[%s1055_s14] sm:$0x3] }
  0x37   : > { %v349_v23 = vld [vmem:[%s1060_s26] sm:$0x3]  ;;  %p787_p5 = pnand %p786_p4, %p1000_p9  ;;  %p792_p10 = por %p791_p8, %p790_p7 }
  0x38   : > { %v360_v8 = vld [vmem:[%s1065_s27] sm:$0x3]  ;;  %v706_v10 = vpop.eup %705 }
  0x39   : > { %v361_v9 = vadd.f32 %v360_v8, %v348_v7  ;;  %v332_v11 = vadd.f32 1.0, %v706_v10  ;;  %p788_p6 = pneg %p787_p5 }
  0x3b   : > { %362 = vst.msk [vmem:[%s1065_s27] sm:$0x3] %vm1051_vm0, %v361_v9  ;;  %707 = vrcp.f32 %v332_v11  ;;  %v344_v14 = vand.u32 2147483648, %v332_v11  ;;  %vm338_vm1 = vweird.f32 %v332_v11  ;;  %v342_v16 = vand.u32 2147483647, %v332_v11  ;;  %s388_s27 = sshll.u32 %s1060_s26, 4  ;;  %p793_p13 = pnand %p792_p10, %p788_p6  ;;  %s1103_s27 = int_to_ptr.vmem [resolvable:$true] %s388_s27 }
  0x3d   : > { %v345_v18 = vor.u32 1.1754944e-38, %v344_v14  ;;  %vm343_vm4 = vcmp.eq.f32.partialorder %v342_v16, 8.507059e+37 }
  0x41   : > { %v708_v12 = vpop.eup %707 }
  0x42   : > { %v334_v13 = vmul.f32 %v708_v12, %v332_v11  ;;  %vm339_vm2 = vweird.f32 %v708_v12 }
  0x43   : > { %vm340_vm3 = vmor %vm338_vm1, %vm339_vm2 }
  0x44   : > { %v335_v15 = vsub.f32 1.0, %v334_v13 }
  0x46   : > { %v336_v17 = vmul.f32 %v708_v12, %v335_v15 }
  0x48   : > { %v337_v19 = vadd.f32 %v708_v12, %v336_v17 }
  0x4a   : > { %v341_v21 = vsel %vm340_vm3, %v708_v12, %v337_v19 }
  0x4b   : > { %v346_v22 = vsel %vm343_vm4, %v345_v18, %v341_v21 }
  0x4c   : > { %v358_v24 = vadd.f32 %v357_v20, %v346_v22  ;;  %v350_v25 = vmul.f32 %v348_v7, %v346_v22 }
  0x4e   : > { %359 = vst.msk [vmem:[%s1055_s14] sm:$0x3] %vm1051_vm0, %v358_v24  ;;  %v351_v26 = vadd.f32 %v350_v25, %v349_v23 }
  0x4f   : > { %796 = shalt.err (!%p793_p13)
}
  0x50   : > { %630 = dma.vmem_to_hbm [thread:$0]  (%p1000_p9), %s405_s5, 32, %s407_s0, %s369_s7   ;;  %356 = vst.msk [vmem:[%s1060_s26] sm:$0x3] %vm1051_vm0, %v351_v26 }
  0x51   : > { %s811_s14 = sshra.s32 %s423_s23, 4  ;;  %s817_s25 = scalar_lea.hbm %s1179_s4, 4  ;;  %s812_s14 = int_to_ptr.hbm [resolvable:$true] %s811_s14 }
  0x52   : > { %s813_s6 = scalar_lea.hbm %s812_s14, 2  ;;  %p818_p3 = scmp.lt.s32.totalorder %s812_s14, %s1179_s4 }
  0x53   : > { %p814_p0 = scmp.ne.s32.totalorder %s812_s14, %s813_s6  ;;  %p819_p4 = scmp.lt.s32.totalorder %s817_s25, %s813_s6 }
  0x55   : > { %p815_p1 = pnand %p814_p0, %p1000_p9  ;;  %p820_p5 = por %p819_p4, %p818_p3 }
  0x57   : > { %p816_p2 = pneg %p815_p1 }
  0x59   : > { %p821_p6 = pnand %p820_p5, %p816_p2 }
  0x5b   : > { %824 = shalt.err (!%p821_p6)
}
  0x5c   : > { %631 = dma.vmem_to_hbm [thread:$0]  (%p1000_p9), %s1090_s10, 32, %s423_s23, %s369_s7  }
  0x5d   : > { %s364_s26 = scalar_lea.sflag [#allocation4], %s1037_s22  ;;  %s839_s5 = sshra.s32 %s391_s8, 4  ;;  %s840_s5 = int_to_ptr.hbm [resolvable:$true] %s839_s5 }
  0x5e   : > { %s841_s0 = scalar_lea.hbm %s840_s5, 2  ;;  %s845_s24 = scalar_lea.hbm %s1177_s2, 4 }
  0x5f   : > { %p842_p7 = scmp.ne.s32.totalorder %s840_s5, %s841_s0  ;;  %p846_p13 = scmp.lt.s32.totalorder %s840_s5, %s1177_s2 }
  0x60   : > { %p847_p0 = scmp.lt.s32.totalorder %s845_s24, %s841_s0 }
  0x61   : > { %p843_p8 = pnand %p842_p7, %p1000_p9 }
  0x62   : > { %p848_p1 = por %p847_p0, %p846_p13 }
  0x63   : > { %p844_p10 = pneg %p843_p8 }
  0x65   : > { %p849_p2 = pnand %p848_p1, %p844_p10 }
  0x67   : > { %852 = shalt.err (!%p849_p2)
}
  0x68   : > { %629 = dma.vmem_to_hbm [thread:$0]  (%p1000_p9), %s1103_s27, 32, %s391_s8, %s364_s26  }
  0x69 PF: > { %s434_s22 = sand.u32 1, %s895_s15   ;;  %p643_p3 = pnand %p605_p12, %p1009_p11 }
  0x6a   : > { %s435_s10 = scalar_lea.sflag [#allocation4], %s434_s22 }
  0x6b   : > { %p644_p4 = pneg %p643_p3 }
  0x6d   : > { %886 = dma.done.wait (%p644_p4), %s435_s10, 32  }
  0x6e   : > { %888 = vsyncadd (%p644_p4), %s435_s10, 4294967264  ;;  %s1192_s23 = sadd.s32 4294967294, %s915_s20  }
  0x6f   : > { %s444_s7 = sand.u32 1, %s1192_s23  }
  0x70   : > { %s445_s28 = scalar_lea.sflag [#allocation9], %s444_s7 }
  0x71   : > { %890 = dma.done.wait (%p644_p4), %s445_s28, 64  }
  0x72   : > { %892 = vsyncadd (%p644_p4), %s445_s28, 4294967232  ;;  %s27_s20 = sadd.s32 1, %s915_s20   ;;  %s1193_s30 = sld [smem:[#allocation15_spill]] }
  0x73   : > { %p24_p9 = scmp.ge.s32.totalorder %s27_s20, 4   ;;  %s1194_s15 = smov %s899_s16 }
  0x74   : > { %s1195_s16 = smov %s903_s17  ;;  %s1196_s17 = smov %s1007_s29 }
  0x75   : > { %s1197_s18 = smov %s911_s19  ;;  %26 = sbr.rel (!%p24_p9) target bundleno = 12 (0xc), region = 123 }
  0x78   : > { %s1198_s19 = smov %s1193_s30 }
  0x7a   :  { %461 = vsyncpa [#allocation3], 1 }
  0x7b   :  { %463 = vsyncpa [#allocation3 + $0x1], 1 }
  0x7c   :  { %464 = vsyncpa [#allocation6], 1 }
  0x7d   :  { %466 = vsyncpa [#allocation6 + $0x1], 1 }
  0x7e   :  { %467 = vsyncpa [#allocation4], 1 }
  0x7f   :  { %469 = vsyncpa [#allocation4 + $0x1], 1 }
  0x80   :  { %470 = vsyncpa [#allocation9], 1 }
  0x81   :  { %472 = vsyncpa [#allocation9 + $0x1], 1 }

</bundles_post_ra>
